<compile_context>
chip_gen: v7x
topology: tpu7x:2x2x1
jax: 0.10.0
libtpu: 0.0.40
codegen_flags: <defaults>
</compile_context>

<pallas_src>
import functools

import jax
import jax.numpy as jnp
from jax.experimental import pallas as pl
from jax.experimental.pallas import tpu as pltpu


def _round_up(x: int, m: int) -> int:
    return ((x + m - 1) // m) * m


def _pick_tile(dim: int, max_tile: int = 2048, waste: float = 0.05) -> int:
    """Largest 128*2^k tile <= max_tile with zero-pad waste <= `waste`."""
    dim_min = _round_up(dim, 128)
    limit = max(int(dim_min * (1.0 + waste)), dim_min)
    for t in (2048, 1024, 512, 256, 128):
        if t <= max_tile and t <= dim_min and _round_up(dim, t) <= limit:
            return t
    return 128


def _vmem_budget_bytes() -> int:
    cap = 128 * 1024 * 1024
    try:
        cap = int(getattr(pltpu.get_tpu_info(), "vmem_capacity_bytes", cap))
    except Exception:
        pass
    # ~8 MiB headroom for Mosaic internal scratch / semaphores; never ask for
    # more than ~100 MiB even on the 128 MiB parts (v5e/v6e). On v7x (64 MiB)
    # this yields ~56 MiB.
    return max(min(cap - 8 * 1024 * 1024, 100 * 1024 * 1024), 16 * 1024 * 1024)


# ----------------------------------------------------------------------------
# Kernels
# ----------------------------------------------------------------------------
def _matmul_kernel_resident_x(r_ref, x_ref, o_ref, acc_ref, *, tk):
    """Grid (i over N tiles, k over M tiles). X is fully resident in VMEM."""
    k = pl.program_id(1)

    @pl.when(k == 0)
    def _():
        acc_ref[...] = jnp.zeros_like(acc_ref)

    start = pl.multiple_of(k * tk, tk)
    acc_ref[...] += jnp.dot(
        r_ref[...],
        x_ref[pl.ds(start, tk), :],
        preferred_element_type=jnp.float32,
    )

    @pl.when(k == pl.num_programs(1) - 1)
    def _():
        o_ref[...] = acc_ref[...].astype(o_ref.dtype)


def _matmul_kernel_stream_x(r_ref, x_ref, o_ref, acc_ref):
    """Grid (i over N tiles, k over M tiles). X streamed as (tk, D) tiles."""
    k = pl.program_id(1)

    @pl.when(k == 0)
    def _():
        acc_ref[...] = jnp.zeros_like(acc_ref)

    acc_ref[...] += jnp.dot(
        r_ref[...], x_ref[...], preferred_element_type=jnp.float32
    )

    @pl.when(k == pl.num_programs(1) - 1)
    def _():
        o_ref[...] = acc_ref[...].astype(o_ref.dtype)


# ----------------------------------------------------------------------------
# Core pallas_call on pre-padded, pre-cast operands
# ----------------------------------------------------------------------------
def _conv_padded(Rp, Xp, *, tm, tk, out_dtype):
    """Returns Rp @ Xp (f32 accumulate, out_dtype store). Shapes = tile multiples."""
    Np, Mp = Rp.shape
    Mp2, Dp = Xp.shape
    assert Mp == Mp2 and Np % tm == 0 and Mp % tk == 0 and Dp % 128 == 0

    in_b = jnp.dtype(Rp.dtype).itemsize
    out_b = jnp.dtype(out_dtype).itemsize
    budget = _vmem_budget_bytes()

    grid = (Np // tm, Mp // tk)
    r_spec = pl.BlockSpec((tm, tk), lambda i, k: (i, k))      # R streamed
    o_spec = pl.BlockSpec((tm, Dp), lambda i, k: (i, 0))      # lane-dense output

    # Double-buffered R tiles + double-buffered output tiles + f32 accumulator.
    fixed = 2 * tm * tk * in_b + 2 * tm * Dp * out_b + tm * Dp * 4
    x_bytes = Mp * Dp * in_b

    x_spec = None
    vmem_needed = 0
    if fixed + 2 * x_bytes <= budget:
        # X fully resident: constant block index -> fetched from HBM only once.
        x_spec = pl.BlockSpec((Mp, Dp), lambda i, k: (0, 0))
        vmem_needed = fixed + 2 * x_bytes
    elif fixed + x_bytes <= budget:
        # Still resident if we drop the (useless) second buffer.
        try:
            x_spec = pl.BlockSpec(
                (Mp, Dp), lambda i, k: (0, 0), pipeline_mode=pl.Buffered(1)
            )
            vmem_needed = fixed + x_bytes
        except Exception:
            x_spec = None  # pipeline_mode unsupported -> stream below

    if x_spec is not None:
        kernel = functools.partial(_matmul_kernel_resident_x, tk=tk)
        x_hbm_reads = x_bytes
    else:
        # Fallback: stream X per k tile (still full-D, lane-dense);
        # X is re-read once per row block of R.
        x_spec = pl.BlockSpec((tk, Dp), lambda i, k: (k, 0))
        kernel = _matmul_kernel_stream_x
        vmem_needed = fixed + 2 * tk * Dp * in_b
        x_hbm_reads = (Np // tm) * x_bytes

    cost = pl.CostEstimate(
        flops=2 * Np * Mp * Dp,
        transcendentals=0,
        bytes_accessed=Np * Mp * in_b + x_hbm_reads + Np * Dp * out_b,
    )
    vmem_limit = int(min(budget, max(32 * 1024 * 1024, 2 * vmem_needed)))

    return pl.pallas_call(
        kernel,
        out_shape=jax.ShapeDtypeStruct((Np, Dp), out_dtype),
        grid_spec=pltpu.PrefetchScalarGridSpec(
            num_scalar_prefetch=0,
            grid=grid,
            in_specs=[r_spec, x_spec],
            out_specs=o_spec,
            scratch_shapes=[pltpu.VMEM((tm, Dp), jnp.float32)],
        ),
        compiler_params=pltpu.CompilerParams(
            dimension_semantics=("parallel", "arbitrary"),
            vmem_limit_bytes=vmem_limit,
        ),
        cost_estimate=cost,
    )(Rp, Xp)


# ----------------------------------------------------------------------------
# LightGCNConv.forward equivalent (standalone use: handles cast/pad itself)
# ----------------------------------------------------------------------------
def lightgcn_conv(R, X, *, compute_dtype=jnp.bfloat16, out_dtype=None):
    N, M = R.shape
    M2, D = X.shape
    assert M == M2, "inner dims must match"
    if out_dtype is None:
        out_dtype = X.dtype

    Dp = _round_up(D, 128)
    tk = _pick_tile(M, max_tile=2048)
    Mp = _round_up(M, tk)
    tm = _pick_tile(N, max_tile=1024)
    Np = _round_up(N, tm)
    if Np // tm < 2 and Np >= 256:      # keep both v7x TensorCores busy
        tm //= 2

    Rp = R.astype(compute_dtype)
    Xp = X.astype(compute_dtype)
    if (Np, Mp) != (N, M):
        Rp = jnp.pad(Rp, ((0, Np - N), (0, Mp - M)))
    if (Mp, Dp) != (M, D):
        Xp = jnp.pad(Xp, ((0, Mp - M), (0, Dp - D)))

    out = _conv_padded(Rp, Xp, tm=tm, tk=tk, out_dtype=jnp.float32)
    return out[:N, :D].astype(out_dtype)


# ----------------------------------------------------------------------------
# LightGCN forward (layer propagation + averaging + batch gathers)
# ----------------------------------------------------------------------------
def lightgcn_forward(A_hat, embed_user, embed_item,
                     batch_user, batch_pos_item, batch_neg_item, num_layers):
    num_users = embed_user.shape[0]
    E0 = jnp.concatenate([embed_user, embed_item], axis=0)
    N, D = E0.shape
    assert A_hat.shape == (N, N)

    Dp = _round_up(D, 128)
    tk = _pick_tile(N, max_tile=2048)
    P = _round_up(N, tk)
    tm = min(tk, 1024)
    if P // tm < 2 and P >= 256:        # split the parallel row axis across 2 TCs
        tm //= 2

    # Cast + pad A_hat ONCE (hoisted out of the layer loop) — it is the
    # dominant HBM stream; redoing this per layer ~3x'd its traffic.
    Ab = A_hat.astype(jnp.bfloat16)
    if P != N:
        Ab = jnp.pad(Ab, ((0, P - N), (0, P - N)))

    Xb = E0.astype(jnp.bfloat16)
    if (P, Dp) != (N, D):
        Xb = jnp.pad(Xb, ((0, P - N), (0, Dp - D)))
        sum_g = jnp.pad(E0.astype(jnp.float32), ((0, P - N), (0, Dp - D)))
    else:
        sum_g = E0.astype(jnp.float32)

    for _ in range(num_layers):
        # bf16 layer output (f32 accumulated inside the kernel); stays padded,
        # so no per-layer cast/pad of the embeddings either.
        Xb = _conv_padded(Ab, Xb, tm=tm, tk=tk, out_dtype=jnp.bfloat16)
        sum_g = sum_g + Xb.astype(jnp.float32)

    out = (sum_g / (num_layers + 1))[:N, :D]
    user_g, item_g = out[:num_users], out[num_users:]
    return (user_g[batch_user], item_g[batch_pos_item], item_g[batch_neg_item])


# Pure-JAX reference with the same bf16-in / f32-accumulate / bf16-out precision.
def _lightgcn_forward_ref(A_hat, embed_user, embed_item,
                          batch_user, batch_pos_item, batch_neg_item, num_layers):
    E = jnp.concatenate([embed_user, embed_item], axis=0)
    sum_g = E.astype(jnp.float32)
    Ab = A_hat.astype(jnp.bfloat16)
    Xb = E.astype(jnp.bfloat16)
    for _ in range(num_layers):
        Xb = jnp.dot(Ab, Xb, preferred_element_type=jnp.float32).astype(jnp.bfloat16)
        sum_g = sum_g + Xb.astype(jnp.float32)
    out = sum_g / (num_layers + 1)
    num_users = embed_user.shape[0]
    user_g, item_g = out[:num_users], out[num_users:]
    return (user_g[batch_user], item_g[batch_pos_item], item_g[batch_neg_item])


if __name__ == "__main__":
    # Small, deterministic example consistent with the module.
    num_users, num_items, embed_size, num_layers, batch = 96, 160, 64, 2, 8
    n_total = num_users + num_items

    key = jax.random.PRNGKey(0)
    k_r, k_u, k_i = jax.random.split(key, 3)

    # Random user-item interactions -> symmetric normalized adjacency A_hat.
    R_ui = (jax.random.uniform(k_r, (num_users, num_items)) < 0.05).astype(jnp.float32)
    A = jnp.zeros((n_total, n_total), jnp.float32)
    A = A.at[:num_users, num_users:].set(R_ui)
    A = A.at[num_users:, :num_users].set(R_ui.T)
    rowsum = A.sum(axis=1)
    d_inv_sqrt = jnp.where(rowsum > 0, 1.0 / jnp.sqrt(rowsum), 0.0)
    A_hat = d_inv_sqrt[:, None] * A * d_inv_sqrt[None, :]

    embed_user = 0.1 * jax.random.normal(k_u, (num_users, embed_size), jnp.float32)
    embed_item = 0.1 * jax.random.normal(k_i, (num_items, embed_size), jnp.float32)

    batch_user = jnp.array([0, 5, 17, 42, 63, 7, 88, 3], jnp.int32)
    batch_pos = jnp.array([1, 2, 3, 4, 5, 6, 7, 8], jnp.int32)
    batch_neg = jnp.array([10, 20, 30, 40, 50, 60, 70, 80], jnp.int32)

    # Standalone LightGCNConv check (single Pallas matmul).
    E0 = jnp.concatenate([embed_user, embed_item], axis=0)
    side = lightgcn_conv(A_hat, E0)
    side_ref = jnp.dot(A_hat.astype(jnp.bfloat16), E0.astype(jnp.bfloat16),
                       preferred_element_type=jnp.float32)
    side = jax.block_until_ready(side)
    assert side.shape == (n_total, embed_size)
    assert jnp.allclose(side, side_ref, atol=2e-3, rtol=2e-3)

    # Full LightGCN forward.
    fwd = jax.jit(lightgcn_forward, static_argnums=6)
    u_emb, p_emb, n_emb = fwd(
        A_hat, embed_user, embed_item, batch_user, batch_pos, batch_neg, num_layers
    )
    u_emb, p_emb, n_emb = jax.block_until_ready((u_emb, p_emb, n_emb))

    u_ref, p_ref, n_ref = _lightgcn_forward_ref(
        A_hat, embed_user, embed_item, batch_user, batch_pos, batch_neg, num_layers
    )

    assert u_emb.shape == (batch, embed_size)
    assert p_emb.shape == (batch, embed_size)
    assert n_emb.shape == (batch, embed_size)
    assert jnp.allclose(u_emb, u_ref, atol=2e-3, rtol=2e-3)
    assert jnp.allclose(p_emb, p_ref, atol=2e-3, rtol=2e-3)
    assert jnp.allclose(n_emb, n_ref, atol=2e-3, rtol=2e-3)

    print("KERNEL_OK")
</pallas_src>

<mosaic_0001>
module attributes {stable_mosaic.version = 11 : i64} {
  func.func @_matmul_kernel_resident_x(%arg0: i32, %arg1: i32, %arg2: memref<128x256xbf16, #tpu.memory_space<vmem>>, %arg3: memref<256x128xbf16, #tpu.memory_space<vmem>>, %arg4: memref<128x128xf32, #tpu.memory_space<vmem>>, %arg5: memref<128x128xf32, #tpu.memory_space<vmem>>) attributes {dimension_semantics = [#tpu.dimension_semantics<parallel>, #tpu.dimension_semantics<arbitrary>], iteration_bounds = array<i64: 2, 1>, scalar_prefetch = 0 : i64, scratch_operands = 1 : i64, tpu.core_type = #tpu.core_type<tc>, window_params = [{transform_indices = @transform_0, window_bounds = array<i64: 128, 256>}, {pipeline_mode = #tpu.pipeline_mode<synchronous>, transform_indices = @transform_1, window_bounds = array<i64: 256, 128>}, {transform_indices = @transform_2, window_bounds = array<i64: 128, 128>}]} {
    %c0_i32 = arith.constant 0 : i32
    %0 = arith.cmpi eq, %arg1, %c0_i32 : i32
    %1 = arith.extui %0 : i1 to i32
    %c0_i32_0 = arith.constant 0 : i32
    %2 = arith.cmpi ne, %1, %c0_i32_0 : i32
    scf.if %2 {
      %cst_9 = arith.constant 0.000000e+00 : f32
      %15 = vector.broadcast %cst_9 : f32 to vector<128x128xf32>
      %c0_10 = arith.constant 0 : index
      %c0_11 = arith.constant 0 : index
      %16 = vector.load %arg5[%c0_10, %c0_11] : memref<128x128xf32, #tpu.memory_space<vmem>>, vector<128x128xf32>
      tpu.vector_store %arg5[%c0_10, %c0_11], %15 {strides = array<i32>} : memref<128x128xf32, #tpu.memory_space<vmem>>, vector<128x128xf32>,
    } else {
    }
    %c256_i32 = arith.constant 256 : i32
    %3 = arith.muli %arg1, %c256_i32 : i32
    %4 = tpu.assume_multiple %3, 256 : i32
    %c0 = arith.constant 0 : index
    %c0_1 = arith.constant 0 : index
    %5 = vector.load %arg5[%c0, %c0_1] : memref<128x128xf32, #tpu.memory_space<vmem>>, vector<128x128xf32>
    %c0_2 = arith.constant 0 : index
    %c0_3 = arith.constant 0 : index
    %6 = vector.load %arg2[%c0_2, %c0_3] : memref<128x256xbf16, #tpu.memory_space<vmem>>, vector<128x256xbf16>
    %7 = arith.index_cast %4 : i32 to index
    %c0_4 = arith.constant 0 : index
    %8 = vector.load %arg3[%7, %c0_4] : memref<256x128xbf16, #tpu.memory_space<vmem>>, vector<256x128xbf16>
    %cst = arith.constant dense<0.000000e+00> : vector<128x128xf32>
    %9 = tpu.matmul %6, %8, %cst {dimension_numbers = #tpu.dot_dimension_numbers<[1], [0], [0], [1], [0, 0, 1, 1], [], []>} : vector<128x256xbf16>, vector<256x128xbf16>, vector<128x128xf32> -> vector<128x128xf32>
    %10 = arith.addf %5, %9 : vector<128x128xf32>
    %c0_5 = arith.constant 0 : index
    %c0_6 = arith.constant 0 : index
    %11 = vector.load %arg5[%c0_5, %c0_6] : memref<128x128xf32, #tpu.memory_space<vmem>>, vector<128x128xf32>
    tpu.vector_store %arg5[%c0_5, %c0_6], %10 {strides = array<i32>} : memref<128x128xf32, #tpu.memory_space<vmem>>, vector<128x128xf32>,
    %c0_i32_7 = arith.constant 0 : i32
    %12 = arith.cmpi eq, %arg1, %c0_i32_7 : i32
    %13 = arith.extui %12 : i1 to i32
    %c0_i32_8 = arith.constant 0 : i32
    %14 = arith.cmpi ne, %13, %c0_i32_8 : i32
    scf.if %14 {
      %c0_9 = arith.constant 0 : index
      %c0_10 = arith.constant 0 : index
      %15 = vector.load %arg5[%c0_9, %c0_10] : memref<128x128xf32, #tpu.memory_space<vmem>>, vector<128x128xf32>
      %c0_11 = arith.constant 0 : index
      %c0_12 = arith.constant 0 : index
      %16 = vector.load %arg4[%c0_11, %c0_12] : memref<128x128xf32, #tpu.memory_space<vmem>>, vector<128x128xf32>
      tpu.vector_store %arg4[%c0_11, %c0_12], %15 {strides = array<i32>} : memref<128x128xf32, #tpu.memory_space<vmem>>, vector<128x128xf32>,
    } else {
    }
    return
  }
  func.func @transform_0(%arg0: i32, %arg1: i32) -> (i32, i32) {
    %c0_i32 = arith.constant 0 : i32
    return %arg0, %arg1 : i32, i32
  }
  func.func @transform_1(%arg0: i32, %arg1: i32) -> (i32, i32) {
    %c0_i32 = arith.constant 0 : i32
    %c0_i32_0 = arith.constant 0 : i32
    %c0_i32_1 = arith.constant 0 : i32
    return %c0_i32, %c0_i32_0 : i32, i32
  }
  func.func @transform_2(%arg0: i32, %arg1: i32) -> (i32, i32) {
    %c0_i32 = arith.constant 0 : i32
    %c0_i32_0 = arith.constant 0 : i32
    return %arg0, %c0_i32 : i32, i32
  }
}

</mosaic_0001>

<bundles_post_ra>
// kernel: tpu_custom_call.1
= control target key start
LH: loop header
LB: loop body
LE: loop exit
PB: predicated region body
PF: predicated region fallthrough
CT: control target
= control target key end

     0   :  { %7 = vsyncpa [#allocation4], 0  ;;  %s1419_s0 = inlined_call_operand.hbm [shape: bf16[256,256], index: 0, kind: input, shape index: {}]   ;;  %s1420_s1 = inlined_call_operand.hbm [shape: bf16[256,128], index: 1, kind: input, shape index: {}]   ;;  %s1421_s2 = inlined_call_operand.hbm [shape: f32[256,128], index: 2, kind: output, shape index: {}]  }
   0x1   :  { %9 = vsyncpa [#allocation4 + $0x1], 0 }
   0x2   :  { %10 = vsyncpa [#allocation7], 0 }
   0x3   :  { %11 = vsyncpa [#allocation5], 0 }
   0x4   :  { %13 = vsyncpa [#allocation5 + $0x1], 0  ;;  %s1159_s9 = smov 0   ;;  %s1161_s10 = smov 0  }
   0x5   :  { %s1163_s11 = smov 0   ;;  %s1165_s12 = smov 0  }
   0x6   :  { %s1167_s13 = smov 0   ;;  %s1169_s14 = smov 0  }
   0x7 LB: > { %s737_s15 = sadd.s32 4294967295, %s1133_s14   ;;  %s738_s16 = sadd.s32 4294967294, %s1133_s14   ;;  %s1133_s14 = sphi %s1169_s14, %s19_s14   ;;  %s1129_s13 = sphi %s1167_s13, %s1445_s13   ;;  %s1125_s12 = sphi %s1165_s12, %s1444_s12   ;;  %s1121_s11 = sphi %s1163_s11, %s1443_s11   ;;  %s1117_s10 = sphi %s1161_s10, %s1442_s10   ;;  %s1113_s9 = sphi %s1159_s9, %s1441_s9  }
   0x8   : > { %p53_p0 = scmp.ne.s32.totalorder %s1117_s10, %s1113_s9  ;;  %p1193_p1 = scmp.eq.s32.totalorder %s737_s15, 0 }
   0x9   : > { %p1197_p2 = scmp.eq.s32.totalorder %s737_s15, 1  ;;  %p104_p3 = scmp.eq.s32.totalorder %s738_s16, 1 }
   0xa   : > { %s1426_s17 = scalar_select %p1193_p1, 1, 0 }
   0xb   : > { %s1427_s18 = scalar_select %p1197_p2, 1, 0 }
   0xc   : > { %p1203_p4 = por %p1193_p1, %p53_p0  ;;  %p739_p5 = scmp.ge.s32.totalorder %s1133_s14, 1 }
   0xd   : > { %p1208_p6 = por %p104_p3, %p53_p0  ;;  %p111_p7 = scmp.lt.s32.totalorder %s1133_s14, 3 }
   0xe   : > { %s1428_s19 = scalar_select %p1203_p4, 1, 0 }
   0xf   : > { %s1429_s20 = scalar_select %p1208_p6, 1, 0 }
  0x10   : > { %p1213_p8 = pnand %p739_p5, %p111_p7  ;;  %s1135_s22 = smov [#allocation6]  }
  0x11   : > { %s123_s23 = sshll.u32 %s1135_s22, 4  ;;  %s31_s25 = sadd.s32 1, %s1129_s13  ;;  %s124_s23 = int_to_ptr.vmem [resolvable:$true] %s123_s23 }
  0x12   : > { %s1430_s21 = scalar_select %p1213_p8, 1, 0 }
  0x13   : > { %p878_p9 = pneg %p1213_p8  ;;  %s989_s28 = scalar_lea.hbm %s1420_s1, 2048 }
  0x14   : > { %p990_p12 = scmp.ne.s32.totalorder %s1420_s1, %s989_s28  ;;  %p996_p5 = scmp.lt.u32.totalorder %s989_s28, %s1420_s1 }
  0x15   : > { %p1222_p11 = pnand %p878_p9, %p1193_p1 }
  0x17   : > { %p991_p13 = pneg %p1222_p11 }
  0x19   : > { %p992_p0 = pnand %p991_p13, %p990_p12 }
  0x1b   : > { %p993_p3 = pneg %p992_p0 }
  0x1d   : > { %p998_p7 = pnand %p996_p5, %p993_p3 }
  0x1f   : > { %1001 = shalt.err (!%p998_p7)
}
  0x20   : > { %s1002_s5 = scalar_lea.vmem %s124_s23, 2048  ;;  %p1010_p1 = scmp.lt.s32.totalorder %s124_s23, %s124_s23 }
  0x21   : > { %p1003_p9 = scmp.ne.s32.totalorder %s124_s23, %s1002_s5  ;;  %p1011_p4 = scmp.lt.s32.totalorder %s1002_s5, %s1002_s5 }
  0x23   : > { %p1005_p10 = pnand %p1003_p9, %p991_p13  ;;  %p1012_p8 = por %p1011_p4, %p1010_p1 }
  0x25   : > { %p1006_p6 = pneg %p1005_p10 }
  0x27   : > { %p1013_p2 = pnand %p1012_p8, %p1006_p6 }
  0x29   : > { %1016 = shalt.err (!%p1013_p2)
}
  0x2a   : > { %s1136_s6 = smov 64   ;;  %s1137_s7 = smov 4  }
  0x2b   : > { %881 = dma.hbm_to_vmem [thread:$0]  (!%p1222_p11), %s1420_s1, 2048, %s124_s23, [#allocation7], %s1136_s6, %s1136_s6, %s1137_s7  }
  0x2c   : > { %p33_p1 = scmp.ge.s32.totalorder %s31_s25, 2  ;;  %s40_s16 = sadd.s32 1, %s1121_s11 }
  0x2d   : > { %p47_p2 = scmp.ne.s32.totalorder %s1121_s11, %s1117_s10  ;;  %p48_p4 = scmp.eq.s32.totalorder %s1133_s14, 0 }
  0x2e   : > { %s1447_s25 = smov (%p33_p1, %s31_s25), 0  ;;  %p1433_p8 = scmp.ne.s32.totalorder %s1427_s18, 0 }
  0x2f   : > { %p1249_p6 = por %p48_p4, %p47_p2  ;;  %s35_s24 = ssub.s32 %s1129_s13, %s1447_s25 }
  0x30   : > { %p1255_p10 = por %p1433_p8, %p47_p2  ;;  %p891_p12 = scmp.lt.s32.totalorder %s1133_s14, 2 }
  0x31   : > { %p38_p11 = scmp.eq.s32.totalorder %s35_s24, 0  ;;  %s137_s23 = sand.u32 1, %s1121_s11  }
  0x32   : > { %s742_s27 = sshll.u32 %s137_s23, 7  ;;  %s788_s29 = sshll.u32 %s1129_s13, 11 }
  0x33   : > { %s1264_s28 = scalar_select %p38_p11, %s1121_s11, %s40_s16  }
  0x34   : > { %s1270_s4 = scalar_lea.hbm %s1419_s0, %s788_s29  ;;  %s141_s18 = scalar_lea.vmem [#allocation3], %s742_s27 }
  0x35   : > { %s151_s5 = sshll.u32 %s141_s18, 4  ;;  %p1276_p13 = pnand %p891_p12, %p1249_p6  ;;  %s1272_s5 = int_to_ptr.vmem [resolvable:$true] %s151_s5 }
  0x36   : > { %s1280_s7 = scalar_lea.sflag [#allocation4], %s137_s23  ;;  %s1017_s8 = scalar_lea.hbm %s1270_s4, 2048 }
  0x37   : > { %p1018_p0 = scmp.ne.s32.totalorder %s1270_s4, %s1017_s8  ;;  %p1019_p3 = pneg %p1276_p13 }
  0x38   : > { %s1022_s22 = scalar_lea.hbm %s1419_s0, 4096  ;;  %p1023_p9 = scmp.lt.u32.totalorder %s1270_s4, %s1419_s0 }
  0x39   : > { %p1020_p5 = pnand %p1019_p3, %p1018_p0  ;;  %p1024_p1 = scmp.lt.u32.totalorder %s1022_s22, %s1017_s8 }
  0x3a   : > { %p1026_p4 = scmp.lt.u32.totalorder %s1017_s8, %s1270_s4 }
  0x3b   : > { %p1021_p7 = pneg %p1020_p5  ;;  %p1025_p2 = por %p1024_p1, %p1023_p9 }
  0x3d   : > { %p1027_p6 = por %p1026_p4, %p1025_p2 }
  0x3f   : > { %p1028_p8 = pnand %p1027_p6, %p1021_p7 }
  0x41   : > { %1031 = shalt.err (!%p1028_p8)
}
  0x42   : > { %s1032_s23 = scalar_lea.vmem %s1272_s5, 2048  ;;  %s1138_s29 = smov [#allocation3]  }
  0x43   : > { %p1033_p12 = scmp.ne.s32.totalorder %s1272_s5, %s1032_s23  ;;  %s1037_s30 = sshll.u32 %s1138_s29, 4  ;;  %s1038_s30 = int_to_ptr.vmem [resolvable:$false] %s1037_s30 }
  0x44   : > { %s1039_s3 = scalar_lea.vmem %s1038_s30, 4096  ;;  %p1040_p5 = scmp.lt.s32.totalorder %s1272_s5, %s1038_s30 }
  0x45   : > { %p1035_p11 = pnand %p1033_p12, %p1019_p3  ;;  %p1041_p9 = scmp.lt.s32.totalorder %s1039_s3, %s1032_s23 }
  0x47   : > { %p1036_p0 = pneg %p1035_p11  ;;  %p1042_p1 = por %p1041_p9, %p1040_p5 }
  0x49   : > { %p1043_p2 = pnand %p1042_p1, %p1036_p0 }
  0x4b   : > { %1046 = shalt.err (!%p1043_p2)
}
  0x4c   : > { %s1139_s18 = smov 128   ;;  %s1140_s8 = smov 8  }
  0x4d   : > { %885 = dma.hbm_to_vmem [thread:$0]  (!%p1276_p13), %s1270_s4, 2048, %s1272_s5, %s1280_s7, %s1139_s18, %s1139_s18, %s1140_s8  }
  0x4e   : > { %p1436_p3 = scmp.ne.s32.totalorder %s1430_s21, 0 }
  0x4f   : > { %s1311_s15 = sand.u32 (!%p1436_p3), 1, %s1117_s10   ;;  %p1437_p7 = scmp.ne.s32.totalorder (!%p1436_p3), %s1428_s19, 0 }
  0x50   : > { %163 = sbr.rel (%p1436_p3) target bundleno = 380 (0x17c), region = 28  ;;  %s747_s16 = sshll.u32 (!%p1436_p3), %s1311_s15, 7 }
  0x51   : > { %s166_s22 = scalar_lea.sflag (!%p1436_p3), [#allocation4], %s1311_s15  ;;  %s1317_s24 = scalar_lea.vmem (!%p1436_p3), [#allocation3], %s747_s16 }
  0x57   : > { %1100 = dma.done.wait (%p1437_p7), %s166_s22, 2048  }
  0x58   : > { %1102 = vsyncadd (%p1437_p7), %s166_s22, 4294965248  ;;  %p1438_p13 = scmp.ne.s32.totalorder %s1426_s17, 0 }
  0x5a   : > { %1104 = dma.done.wait (%p1438_p13), [#allocation7], 2048  }
  0x5b   : > { %1106 = vsyncadd (%p1438_p13), [#allocation7], 4294965248  ;;  %v949_v0 = vld [vmem:[#allocation6 + $0x40] sm:$0xff]   ;;  %v951_v2 = vld [vmem:[#allocation6 + $0x48] sm:$0xff]   ;;  %s1345_s17 = scalar_lea.vmem [#allocation8], %s747_s16  ;;  %s789_s19 = sshll.u32 %s1125_s12, 11 }
  0x5c   : > { %v950_v1 = vld [vmem:[#allocation6] sm:$0xff]   ;;  %790 = vmatprep.subr.bf16.mxu0 %v949_v0  ;;  %854 = vmatprep.subr.bf16.mxu1 %v949_v0  ;;  %v952_v3 = vld [vmem:[#allocation6 + $0x8] sm:$0xff]   ;;  %v953_v4 = vld [vmem:[#allocation6 + $0x50] sm:$0xff]   ;;  %s641_s21 = sshll.u32 %s1345_s17, 4  ;;  %s1364_s6 = scalar_lea.hbm %s1421_s2, %s789_s19  ;;  %s1366_s21 = int_to_ptr.vmem [resolvable:$true] %s641_s21 }
  0x5d   : > { %791 = vmatpush3.bf16.msra.mxu0 %v950_v1  ;;  %862 = vmatpush3.bf16.msra.mxu1 %v950_v1  ;;  %v954_v5 = vld [vmem:[#allocation6 + $0x10] sm:$0xff]   ;;  %v955_v6 = vld [vmem:[#allocation6 + $0x58] sm:$0xff]   ;;  %v957_v8 = vld [vmem:[#allocation6 + $0x60] sm:$0xff]   ;;  %s628_s12 = scalar_lea.sflag [#allocation5], %s1311_s15  ;;  %s1047_s7 = scalar_lea.vmem %s1366_s21, 2048 }
  0x5e   : > { %792 = vmatprep.subr.bf16.mxu0 %v951_v2  ;;  %855 = vmatprep.subr.bf16.mxu1 %v951_v2  ;;  %v956_v7 = vld [vmem:[#allocation6 + $0x18] sm:$0xff]   ;;  %v958_v9 = vld [vmem:[#allocation6 + $0x20] sm:$0xff]   ;;  %v959_v10 = vld [vmem:[#allocation6 + $0x68] sm:$0xff]   ;;  %p1048_p4 = scmp.ne.s32.totalorder %s1366_s21, %s1047_s7  ;;  %s1141_s27 = smov [#allocation8]  }
  0x5f   : > { %v967_v11 = vld [vmem:[%s1317_s24 + $0x4] ss:$8 sps:$4 sm:$0xff]   ;;  %v961_v14 = vld [vmem:[#allocation6 + $0x70] sm:$0xff]   ;;  %v963_v16 = vld [vmem:[#allocation6 + $0x78] sm:$0xff]   ;;  %s1051_s23 = sshll.u32 %s1141_s27, 4  ;;  %s1052_s23 = int_to_ptr.vmem [resolvable:$false] %s1051_s23 }
  0x60   : > { %v970_v12 = vld [vmem:[%s1317_s24 + $0x44] ss:$8 sps:$4 sm:$0xff]   ;;  %495 = vmatprep.mubr.bf16.mxu0 %v967_v11  ;;  %v962_v15 = vld [vmem:[#allocation6 + $0x30] sm:$0xff]   ;;  %v964_v17 = vld [vmem:[#allocation6 + $0x38] sm:$0xff]   ;;  %p1049_p6 = pnand %p1048_p4, %p1255_p10  ;;  %s1053_s29 = scalar_lea.vmem %s1052_s23, 4096 }
  0x61   : > { %793 = vmatpush3.bf16.msra.mxu0 %v952_v3  ;;  %863 = vmatpush3.bf16.msra.mxu1 %v952_v3  ;;  %v960_v13 = vld [vmem:[#allocation6 + $0x28] sm:$0xff]   ;;  %v971_v20 = vld [vmem:[%s1317_s24 + $0x14] ss:$8 sps:$4 sm:$0xff]   ;;  %v975_v22 = vld [vmem:[%s1317_s24 + $0x10] ss:$8 sps:$4 sm:$0xff]   ;;  %p1054_p12 = scmp.lt.s32.totalorder %s1366_s21, %s1052_s23  ;;  %p1055_p11 = scmp.lt.s32.totalorder %s1053_s29, %s1047_s7 }
  0x62   : > { %794 = vmatprep.subr.bf16.mxu0 %v953_v4  ;;  %856 = vmatprep.subr.bf16.mxu1 %v953_v4  ;;  %v965_v18 = vld [vmem:[%s1317_s24] ss:$8 sps:$4 sm:$0xff]   ;;  %v973_v21 = vld [vmem:[%s1317_s24 + $0x54] ss:$8 sps:$4 sm:$0xff]   ;;  %v976_v23 = vld [vmem:[%s1317_s24 + $0x50] ss:$8 sps:$4 sm:$0xff]   ;;  %p1050_p8 = pneg %p1049_p6 }
  0x63   : > { %527 = vmatprep.mubr.bf16.mxu1 %v970_v12  ;;  %v968_v19 = vld [vmem:[%s1317_s24 + $0x40] ss:$8 sps:$4 sm:$0xff]   ;;  %v977_v24 = vld [vmem:[%s1317_s24 + $0x24] ss:$8 sps:$4 sm:$0xff]   ;;  %v983_v28 = vld [vmem:[%s1317_s24 + $0x34] ss:$8 sps:$4 sm:$0xff]   ;;  %p1056_p0 = por %p1055_p11, %p1054_p12 }
  0x64   : > { %v979_v25 = vld [vmem:[%s1317_s24 + $0x64] ss:$8 sps:$4 sm:$0xff]   ;;  %v981_v26 = vld [vmem:[%s1317_s24 + $0x20] ss:$8 sps:$4 sm:$0xff]   ;;  %v985_v29 = vld [vmem:[%s1317_s24 + $0x74] ss:$8 sps:$4 sm:$0xff]  }
  0x65   : > { %795 = vmatpush3.bf16.msra.mxu0 %v954_v5  ;;  %864 = vmatpush3.bf16.msra.mxu1 %v954_v5  ;;  %v982_v27 = vld [vmem:[%s1317_s24 + $0x60] ss:$8 sps:$4 sm:$0xff]   ;;  %v987_v30 = vld [vmem:[%s1317_s24 + $0x30] ss:$8 sps:$4 sm:$0xff]   ;;  %p1057_p5 = pnand %p1056_p0, %p1050_p8 }
  0x66   : > { %796 = vmatprep.subr.bf16.mxu0 %v955_v6  ;;  %857 = vmatprep.subr.bf16.mxu1 %v955_v6  ;;  %v988_v31 = vld [vmem:[%s1317_s24 + $0x70] ss:$8 sps:$4 sm:$0xff]  }
  0x69   : > { %797 = vmatpush3.bf16.msra.mxu0 %v956_v7  ;;  %865 = vmatpush3.bf16.msra.mxu1 %v956_v7 }
  0x6a   : > { %798 = vmatprep.subr.bf16.mxu0 %v957_v8  ;;  %858 = vmatprep.subr.bf16.mxu1 %v957_v8 }
  0x6d   : > { %799 = vmatpush3.bf16.msra.mxu0 %v958_v9  ;;  %866 = vmatpush3.bf16.msra.mxu1 %v958_v9 }
  0x6e   : > { %800 = vmatprep.subr.bf16.mxu0 %v959_v10  ;;  %859 = vmatprep.subr.bf16.mxu1 %v959_v10 }
  0x71   : > { %801 = vmatpush3.bf16.msra.mxu0 %v960_v13  ;;  %867 = vmatpush3.bf16.msra.mxu1 %v960_v13 }
  0x72   : > { %802 = vmatprep.subr.bf16.mxu0 %v961_v14  ;;  %860 = vmatprep.subr.bf16.mxu1 %v961_v14 }
  0x75   : > { %803 = vmatpush3.bf16.msra.mxu0 %v962_v15  ;;  %868 = vmatpush3.bf16.msra.mxu1 %v962_v15 }
  0x76   : > { %804 = vmatprep.subr.bf16.mxu0 %v963_v16  ;;  %861 = vmatprep.subr.bf16.mxu1 %v963_v16 }
  0x79   : > { %805 = vmatpush3.bf16.msra.mxu0 %v964_v17  ;;  %869 = vmatpush3.bf16.msra.mxu1 %v964_v17 }
  0x7c   : > { %496 = vmatmul.mubr.bf16.vlgmr.msra.gmra.mrb[0].mxu0 %v965_v18  ;;  %528 = vmatmul.mubr.bf16.vlgmr.msra.gmra.mrb[0].mxu1 %v968_v19 }
  0x7d   : > { %503 = vmatprep.mubr.bf16.mxu0 %v971_v20  ;;  %535 = vmatprep.mubr.bf16.mxu1 %v973_v21 }
  0x84   : > { %504 = vmatmul.mubr.bf16.gmra.mrb[4].mxu0 %v975_v22  ;;  %536 = vmatmul.mubr.bf16.gmra.mrb[4].mxu1 %v976_v23 }
  0x85   : > { %511 = vmatprep.mubr.bf16.mxu0 %v977_v24  ;;  %543 = vmatprep.mubr.bf16.mxu1 %v979_v25 }
  0x8c   : > { %512 = vmatmul.mubr.bf16.gmra.mrb[8].mxu0 %v981_v26  ;;  %544 = vmatmul.mubr.bf16.gmra.mrb[8].mxu1 %v982_v27 }
  0x8d   : > { %519 = vmatprep.mubr.bf16.mxu0 %v983_v28  ;;  %551 = vmatprep.mubr.bf16.mxu1 %v985_v29 }
  0x94   : > { %520 = vmatmul.mubr.bf16.gmra.mrb[12].mxu0 %v987_v30  ;;  %552 = vmatmul.mubr.bf16.gmra.mrb[12].mxu1 %v988_v31 }
 0x14f   : > { %v806_v32 = vpop.f32.mrb[0].mxu0  ;;  %v830_v33 = vpop.f32.mrb[0].mxu1 }
 0x150   : > { %v807_v34 = vpop.f32.mrb[1].mxu0  ;;  %v831_v35 = vpop.f32.mrb[1].mxu1 }
 0x151   : > { %v808_v36 = vadd.f32 %v807_v34, %v806_v32  ;;  %v832_v37 = vadd.f32 %v831_v35, %v830_v33  ;;  %v809_v38 = vpop.f32.mrb[2].mxu0  ;;  %v833_v39 = vpop.f32.mrb[2].mxu1 }
 0x152   : > { %v810_v40 = vpop.f32.mrb[3].mxu0  ;;  %v834_v41 = vpop.f32.mrb[3].mxu1 }
 0x153   : > { %611 = vst [vmem:[%s1345_s17] sm:$0xff] %v808_v36  ;;  %619 = vst [vmem:[%s1345_s17 + $0x40] sm:$0xff] %v832_v37  ;;  %v811_v42 = vadd.f32 %v810_v40, %v809_v38  ;;  %v835_v43 = vadd.f32 %v834_v41, %v833_v39 }
 0x155   : > { %612 = vst [vmem:[%s1345_s17 + $0x8] sm:$0xff] %v811_v42  ;;  %620 = vst [vmem:[%s1345_s17 + $0x48] sm:$0xff] %v835_v43 }
 0x157   : > { %v812_v44 = vpop.f32.mrb[4].mxu0  ;;  %v836_v45 = vpop.f32.mrb[4].mxu1 }
 0x158   : > { %v813_v46 = vpop.f32.mrb[5].mxu0  ;;  %v837_v47 = vpop.f32.mrb[5].mxu1 }
 0x159   : > { %v814_v48 = vadd.f32 %v813_v46, %v812_v44  ;;  %v838_v49 = vadd.f32 %v837_v47, %v836_v45  ;;  %v815_v50 = vpop.f32.mrb[6].mxu0  ;;  %v839_v51 = vpop.f32.mrb[6].mxu1 }
 0x15a   : > { %v816_v52 = vpop.f32.mrb[7].mxu0  ;;  %v840_v53 = vpop.f32.mrb[7].mxu1 }
 0x15b   : > { %613 = vst [vmem:[%s1345_s17 + $0x10] sm:$0xff] %v814_v48  ;;  %621 = vst [vmem:[%s1345_s17 + $0x50] sm:$0xff] %v838_v49  ;;  %v817_v54 = vadd.f32 %v816_v52, %v815_v50  ;;  %v841_v55 = vadd.f32 %v840_v53, %v839_v51 }
 0x15d   : > { %614 = vst [vmem:[%s1345_s17 + $0x18] sm:$0xff] %v817_v54  ;;  %622 = vst [vmem:[%s1345_s17 + $0x58] sm:$0xff] %v841_v55 }
 0x15f   : > { %v818_v56 = vpop.f32.mrb[8].mxu0  ;;  %v842_v57 = vpop.f32.mrb[8].mxu1 }
 0x160   : > { %v819_v58 = vpop.f32.mrb[9].mxu0  ;;  %v843_v59 = vpop.f32.mrb[9].mxu1 }
 0x161   : > { %v820_v60 = vadd.f32 %v819_v58, %v818_v56  ;;  %v844_v61 = vadd.f32 %v843_v59, %v842_v57  ;;  %v821_v62 = vpop.f32.mrb[10].mxu0  ;;  %v845_v63 = vpop.f32.mrb[10].mxu1 }
 0x162   : > { %v822_v0 = vpop.f32.mrb[11].mxu0  ;;  %v846_v1 = vpop.f32.mrb[11].mxu1 }
 0x163   : > { %615 = vst [vmem:[%s1345_s17 + $0x20] sm:$0xff] %v820_v60  ;;  %623 = vst [vmem:[%s1345_s17 + $0x60] sm:$0xff] %v844_v61  ;;  %v823_v2 = vadd.f32 %v822_v0, %v821_v62  ;;  %v847_v3 = vadd.f32 %v846_v1, %v845_v63 }
 0x165   : > { %616 = vst [vmem:[%s1345_s17 + $0x28] sm:$0xff] %v823_v2  ;;  %624 = vst [vmem:[%s1345_s17 + $0x68] sm:$0xff] %v847_v3 }
 0x167   : > { %v824_v4 = vpop.f32.mrb[12].mxu0  ;;  %v848_v5 = vpop.f32.mrb[12].mxu1 }
 0x168   : > { %v825_v6 = vpop.f32.mrb[13].mxu0  ;;  %v849_v7 = vpop.f32.mrb[13].mxu1 }
 0x169   : > { %v826_v8 = vadd.f32 %v825_v6, %v824_v4  ;;  %v850_v9 = vadd.f32 %v849_v7, %v848_v5  ;;  %v827_v10 = vpop.f32.mrb[14].mxu0  ;;  %v851_v11 = vpop.f32.mrb[14].mxu1 }
 0x16a   : > { %v828_v12 = vpop.f32.mrb[15].mxu0  ;;  %v852_v13 = vpop.f32.mrb[15].mxu1 }
 0x16b   : > { %617 = vst [vmem:[%s1345_s17 + $0x30] sm:$0xff] %v826_v8  ;;  %625 = vst [vmem:[%s1345_s17 + $0x70] sm:$0xff] %v850_v9  ;;  %v829_v14 = vadd.f32 %v828_v12, %v827_v10  ;;  %v853_v15 = vadd.f32 %v852_v13, %v851_v11 }
 0x16d   : > { %618 = vst [vmem:[%s1345_s17 + $0x38] sm:$0xff] %v829_v14  ;;  %626 = vst [vmem:[%s1345_s17 + $0x78] sm:$0xff] %v853_v15 }
 0x16e   : > { %1060 = shalt.err (!%p1057_p5)
}
 0x16f   : > { %s1061_s30 = scalar_lea.hbm %s1364_s6, 2048  ;;  %s1065_s8 = scalar_lea.hbm %s1421_s2, 4096 }
 0x170   : > { %p1062_p9 = scmp.ne.s32.totalorder %s1364_s6, %s1061_s30  ;;  %p1066_p3 = scmp.lt.u32.totalorder %s1364_s6, %s1421_s2 }
 0x171   : > { %p1067_p7 = scmp.lt.u32.totalorder %s1065_s8, %s1061_s30  ;;  %p1069_p4 = scmp.lt.u32.totalorder %s1061_s30, %s1364_s6 }
 0x172   : > { %p1063_p1 = pnand %p1062_p9, %p1255_p10 }
 0x173   : > { %p1068_p13 = por %p1067_p7, %p1066_p3 }
 0x174   : > { %p1064_p2 = pneg %p1063_p1 }
 0x175   : > { %p1070_p6 = por %p1069_p4, %p1068_p13 }
 0x177   : > { %p1071_p8 = pnand %p1070_p6, %p1064_p2 }
 0x179   : > { %1074 = shalt.err (!%p1071_p8)
}
 0x17a   : > { %s1142_s24 = smov 128   ;;  %s1143_s17 = smov 8  }
 0x17b   : > { %876 = dma.vmem_to_hbm [thread:$0]  (%p1255_p10), %s1366_s21, 2048, %s1364_s6, %s628_s12, %s1142_s24, %s1142_s24, %s1143_s17  }
 0x17c PF: > { %s656_s19 = sand.u32 1, %s1113_s9   ;;  %p1439_p12 = scmp.ne.s32.totalorder %s1429_s20, 0 }
 0x17d   : > { %p1440_p11 = scmp.ge.s32.totalorder %s1133_s14, 2  ;;  %s657_s4 = scalar_lea.sflag [#allocation5], %s656_s19 }
 0x17f   : > { %p887_p0 = pnand %p1440_p11, %p1439_p12 }
 0x181   : > { %1108 = dma.done.wait (!%p887_p0), %s657_s4, 2048  }
 0x182   : > { %1110 = vsyncadd (!%p887_p0), %s657_s4, 4294965248  ;;  %s19_s14 = sadd.s32 1, %s1133_s14   ;;  %s1441_s9 = smov %s1117_s10 }
 0x183   : > { %p16_p5 = scmp.ge.s32.totalorder %s19_s14, 4   ;;  %s1442_s10 = smov %s1121_s11 }
 0x184   : > { %s1443_s11 = smov %s1264_s28  ;;  %s1444_s12 = smov %s1129_s13 }
 0x185   : > { %s1445_s13 = smov %s1447_s25  ;;  %18 = sbr.rel (!%p16_p5) target bundleno = 7 (0x7), region = 86 }
 0x18c   :  { %662 = vsyncpa [#allocation4], 1 }
 0x18d   :  { %664 = vsyncpa [#allocation4 + $0x1], 1 }
 0x18e   :  { %665 = vsyncpa [#allocation7], 1 }
 0x18f   :  { %666 = vsyncpa [#allocation5], 1 }
 0x190   :  { %668 = vsyncpa [#allocation5 + $0x1], 1 }

</bundles_post_ra>
